<compile_context>
chip_gen: v7x
topology: tpu7x:2x2x1
jax: 0.10.0
libtpu: 0.0.40
codegen_flags: <defaults>
</compile_context>

<pallas_src>
import jax
import jax.numpy as jnp
import numpy as np
from jax.experimental import pallas as pl
from jax.experimental.pallas import tpu as pltpu

CLIP_R = 1.0        # clip_r
TAU = 10.0          # tau
CURVATURE = 1.0     # PoincareBall(c=1.0)

LANE = 128
# Batch rows per head-kernel grid step.  8 = sublane minimum (fine for the toy run);
# at production use 128 (v5e MXU rows) or 256 (v6e/v7x MXU rows).
B_TILE = 8
# Class-tile target: bounds the resident protoT slab to E_pad*N_TILE bf16 bytes so
# double-buffered blocks fit v7x's 64 MiB (and v5e's 16 MiB default scoped) VMEM.
N_TILE_TARGET = 2048


def _round_up(n, m):
    return ((n + m - 1) // m) * m


# ---------------------------------------------------------------------------
# Kernel 1: backbone stand-in (1x1 conv + ReLU) + global average pool.
# One image per grid step (grid=(B_pad,), "parallel" -> both v7x TCs used).
#   x_ref:      (1, Cin, HW)   f32  (HW on the lane axis -> dense DMA)
#   wcT_ref:    (Cf_pad, Cin)  bf16
#   bcol_ref:   (Cf_pad, 1)    f32
#   pooled_ref: (1, 1, Cf_pad) bf16 lane-dense pooled-feature row
# ---------------------------------------------------------------------------
def backbone_gap_kernel(x_ref, wcT_ref, bcol_ref, pooled_ref):
    hw = x_ref.shape[2]
    # cast the activation in-kernel (no standalone wrapper-side cast of x)
    xb = x_ref[0].astype(jnp.bfloat16)                               # (Cin, HW)
    # bf16 x bf16 -> f32 accumulate on the MXU.  K = Cin = 4, so this stand-in conv
    # is MXU push/drain dominated; the real backbone is external, deliberately untuned.
    y = jnp.dot(wcT_ref[...], xb, preferred_element_type=jnp.float32)  # (Cf_pad, HW)
    y = jnp.maximum(y + bcol_ref[...], 0.0)                           # bias + ReLU
    # GAP as a ones-row trans-B contraction (same contraction structure as the
    # flash-attention 'bqd,bkd->bqk' pattern) so pooled lands lane-dense as a row.
    ones_row = jnp.ones((1, hw), jnp.float32)
    pooled = jnp.einsum("op,fp->of", ones_row, y,
                        preferred_element_type=jnp.float32) * (1.0 / hw)  # (1, Cf_pad)
    pooled_ref[0] = pooled.astype(pooled_ref.dtype)


# ---------------------------------------------------------------------------
# Kernel 2: batched fc -> clip -> expmap0 -> Poincare distance -> logits.
# Grid = (batch_tiles, class_tiles).  The embedding is computed once per batch
# tile (inner class axis == "arbitrary") and reused from VMEM scratch.
#   pooled_ref: (B_TILE, Cf_pad)  bf16
#   wfc_ref:    (Cf_pad, E_pad)   bf16   (grid-invariant block)
#   bfc_ref:    (1, E_pad)        f32    (grid-invariant block)
#   pT_ref:     (E_pad, N_TILE)   bf16   prototypes^T class tile
#   pxx_ref:    (1, N_TILE)       f32    ||p||^2            (precomputed)
#   pbcf_ref:   (1, N_TILE)       f32    1 - ||p||^2        (precomputed)
#   pbcf2_ref:  (1, N_TILE)       f32    (1 - ||p||^2)^2    (precomputed)
#   out_ref:    (B_TILE, N_TILE)  f32    logits tile
#   yh_s:       (B_TILE, E_pad)   f32    scratch: expmapped embedding
#   yy_s:       (B_TILE, 1)       f32    scratch: ||y||^2
# ---------------------------------------------------------------------------
def head_kernel(pooled_ref, wfc_ref, bfc_ref, pT_ref, pxx_ref, pbcf_ref, pbcf2_ref,
                out_ref, yh_s, yy_s):
    @pl.when(pl.program_id(1) == 0)
    def _():
        # fc (standardize == nn.Identity): bf16 x bf16 -> f32 accumulate.
        z = jnp.dot(pooled_ref[...], wfc_ref[...],
                    preferred_element_type=jnp.float32) + bfc_ref[...]   # (Bt, E_pad)
        # clip_features: X * min(1, clip_r / (||X|| + 1e-5))
        zn = jnp.sqrt(jnp.sum(z * z, axis=-1, keepdims=True)) + 1e-5     # (Bt, 1)
        fac = jnp.minimum(1.0, CLIP_R / zn)
        zc = z * fac
        # Poincare expmap at origin (c=1): tanh(||v||) * v / ||v||;
        # ||zc|| derived analytically from the clip norm (one reduction only).
        vn = (zn - 1e-5) * fac
        th = jnp.tanh(vn)
        yh = zc * (th / jnp.maximum(vn, 1e-15))
        yh_s[...] = yh
        # ||y||^2 from the bf16-quantized embedding so it is consistent with the
        # bf16 operand fed to the prototype matmul below.
        yhq = yh.astype(jnp.bfloat16).astype(jnp.float32)
        yy_s[...] = jnp.sum(yhq * yhq, axis=-1, keepdims=True)

    yy = yy_s[...]                                    # (Bt, 1)
    xx = pxx_ref[...]                                 # (1, Nt)
    bcf = pbcf_ref[...]                               # (1, Nt)
    bcf2 = pbcf2_ref[...]                             # (1, Nt)

    # <y, p> for the whole (Bt x Nt) tile: bf16 x bf16 -> f32 on the MXU.
    xy = jnp.dot(yh_s[...].astype(jnp.bfloat16), pT_ref[...],
                 preferred_element_type=jnp.float32)                  # (Bt, Nt)

    # Poincare distance (c=1), expanded mobius_add(-p, y) norm.
    # NOTE: the expanded ||num||^2 form can cancel when y ~= p; fine for forward
    # logits (distances are O(1) here) but revisit before reusing in a custom VJP.
    a = (1.0 + yy) - 2.0 * xy
    num_sq = (a * a) * xx + bcf2 * yy - (2.0 * bcf) * (a * xy)
    den = (1.0 - 2.0 * xy) + xx * yy
    u = jnp.sqrt(jnp.maximum(num_sq, 0.0)) / den      # exact divide (distance-critical)
    u = jnp.clip(u, 0.0, 1.0 - 1e-7)
    # dist = 2 artanh(u) = log(1 + 2u/(1-u)); exact divide per review (approx EUP
    # reciprocal error is amplified by tau near the clip boundary).
    dist = jnp.log(1.0 + 2.0 * u / (1.0 - u))
    out_ref[...] = (-TAU) * dist


# ---------------------------------------------------------------------------
# Wrapper: two pallas_calls (backbone+GAP, then batched head).
# ---------------------------------------------------------------------------
def retrieval_net_forward(x_nchw, prep):
    B, Cin, H, W = x_nchw.shape
    HW = H * W
    cf_pad = prep["w_convT"].shape[0]
    e_pad = prep["w_fc"].shape[1]
    n_pad = prep["protoT"].shape[1]
    n_tile = prep["n_tile"]
    N = prep["num_classes"]

    b_pad = _round_up(B, B_TILE)
    # NCHW -> (B, Cin, HW) is a free reshape (HW stays on the fast/lane axis).
    # Pad the batch to a multiple of B_TILE; pad rows stay finite and are sliced off.
    x = x_nchw.reshape(B, Cin, HW)
    if b_pad != B:
        x = jnp.pad(x, ((0, b_pad - B), (0, 0), (0, 0)))

    # ---- kernel 1: backbone stand-in + GAP ------------------------------------
    pooled = pl.pallas_call(
        backbone_gap_kernel,
        out_shape=jax.ShapeDtypeStruct((b_pad, 1, cf_pad), jnp.bfloat16),
        grid=(b_pad,),
        in_specs=[
            pl.BlockSpec((1, Cin, HW), lambda b: (b, 0, 0)),
            pl.BlockSpec((cf_pad, Cin), lambda b: (0, 0)),
            pl.BlockSpec((cf_pad, 1), lambda b: (0, 0)),
        ],
        out_specs=pl.BlockSpec((1, 1, cf_pad), lambda b: (b, 0, 0)),
        compiler_params=pltpu.CompilerParams(dimension_semantics=("parallel",)),
    )(x, prep["w_convT"], prep["b_conv_col"])
    pooled = pooled.reshape(b_pad, cf_pad)          # free reshape, stays lane-dense

    # ---- kernel 2: batched fc + clip + expmap + Poincare logits ---------------
    grid = (b_pad // B_TILE, n_pad // n_tile)
    cost = pl.CostEstimate(
        flops=int(2 * b_pad * cf_pad * e_pad + 2 * b_pad * e_pad * n_pad
                  + 14 * b_pad * n_pad),
        transcendentals=int(b_pad * n_pad + 2 * b_pad),
        bytes_accessed=int(pooled.size * 2 + prep["w_fc"].size * 2
                           + prep["b_fc"].size * 4 + prep["protoT"].size * 2
                           + 3 * n_pad * 4 + b_pad * n_pad * 4),
    )
    logits = pl.pallas_call(
        head_kernel,
        out_shape=jax.ShapeDtypeStruct((b_pad, n_pad), jnp.float32),
        grid=grid,
        in_specs=[
            pl.BlockSpec((B_TILE, cf_pad), lambda i, j: (i, 0)),
            # w_fc / b_fc blocks are grid-invariant: Pallas skips re-DMA when the
            # block index does not change; the idle second buffer is accepted here
            # (N-tiling already bounds the resident footprint; could additionally be
            # single-buffered via pipeline_mode=pl.Buffered(1) on newer JAX).
            pl.BlockSpec((cf_pad, e_pad), lambda i, j: (0, 0)),
            pl.BlockSpec((1, e_pad), lambda i, j: (0, 0)),
            pl.BlockSpec((e_pad, n_tile), lambda i, j: (0, j)),
            pl.BlockSpec((1, n_tile), lambda i, j: (0, j)),
            pl.BlockSpec((1, n_tile), lambda i, j: (0, j)),
            pl.BlockSpec((1, n_tile), lambda i, j: (0, j)),
        ],
        out_specs=pl.BlockSpec((B_TILE, n_tile), lambda i, j: (i, j)),
        scratch_shapes=[pltpu.VMEM((B_TILE, e_pad), jnp.float32),
                        pltpu.VMEM((B_TILE, 1), jnp.float32)],
        # Batch tiles are independent -> "parallel" (megacore / v7x's 2 TCs at
        # production batch sizes); class tiles reuse the per-batch-tile embedding
        # scratch -> "arbitrary" (kept on one core, iterated in order).
        compiler_params=pltpu.CompilerParams(
            dimension_semantics=("parallel", "arbitrary")),
        cost_estimate=cost,
    )(pooled, prep["w_fc"], prep["b_fc"], prep["protoT"], prep["proto_sq"],
      prep["proto_bcf"], prep["proto_bcf2"])

    return logits[:B, :N]                                             # (B, N)


# ---------------------------------------------------------------------------
# One-time parameter preparation (load-time): transpose / zero-pad to lane-dense
# shapes / bf16 storage for MXU operands / precomputed per-prototype constants.
# Zero padding is semantically transparent (padded channels / dims / classes are
# zero and padded logits are sliced off).
# ---------------------------------------------------------------------------
def prepare_params(raw, *, lane=LANE, n_tile_target=N_TILE_TARGET):
    Cin, Cfeat = raw["w_conv"].shape
    E = raw["w_fc"].shape[1]
    N = raw["prototypes"].shape[0]
    cf_pad = _round_up(Cfeat, lane)
    e_pad = _round_up(E, lane)
    n_tile = min(n_tile_target, _round_up(N, lane))
    n_pad = _round_up(N, n_tile)

    w_convT = jnp.zeros((cf_pad, Cin), jnp.float32).at[:Cfeat, :].set(raw["w_conv"].T)
    w_convT = w_convT.astype(jnp.bfloat16)                            # (Cf_pad, Cin)
    b_conv_col = jnp.zeros((cf_pad, 1), jnp.float32).at[:Cfeat, 0].set(
        raw["b_conv"].reshape(-1))                                    # (Cf_pad, 1)

    w_fc = jnp.zeros((cf_pad, e_pad), jnp.float32).at[:Cfeat, :E].set(raw["w_fc"])
    w_fc = w_fc.astype(jnp.bfloat16)                                  # (Cf_pad, E_pad)
    b_fc = jnp.zeros((1, e_pad), jnp.float32).at[0, :E].set(raw["b_fc"].reshape(-1))

    proto = jnp.zeros((n_pad, e_pad), jnp.float32).at[:N, :E].set(raw["prototypes"])
    proto_bf = proto.astype(jnp.bfloat16)                             # stored bf16
    proto_f32 = proto_bf.astype(jnp.float32)
    protoT = proto_bf.T                                               # (E_pad, N_pad) bf16
    xx = jnp.sum(proto_f32 * proto_f32, axis=1)[None, :]              # (1, N_pad) ||p||^2
    bcf = 1.0 - xx
    bcf2 = bcf * bcf

    return dict(w_convT=w_convT, b_conv_col=b_conv_col, w_fc=w_fc, b_fc=b_fc,
                protoT=protoT, proto_sq=xx, proto_bcf=bcf, proto_bcf2=bcf2,
                num_classes=N, n_tile=n_tile)


# ---------------------------------------------------------------------------
# Pure-JAX reference (literal mobius_add / dist form) on the same prepared params,
# mirroring the kernel's bf16 operand quantization points.
# ---------------------------------------------------------------------------
def forward_ref(x_nchw, prep):
    B, Cin, H, W = x_nchw.shape
    N = prep["num_classes"]
    x = x_nchw.reshape(B, Cin, H * W).astype(jnp.bfloat16).astype(jnp.float32)
    wcT = prep["w_convT"].astype(jnp.float32)                         # (Cf_pad, Cin)
    y = jnp.einsum("fc,bcp->bfp", wcT, x) + prep["b_conv_col"][None]
    y = jnp.maximum(y, 0.0)
    pooled = y.mean(axis=2)                                           # (B, Cf_pad)
    pooled = pooled.astype(jnp.bfloat16).astype(jnp.float32)          # kernel-1 output dtype
    z = pooled @ prep["w_fc"].astype(jnp.float32) + prep["b_fc"]      # (B, E_pad)
    zn = jnp.linalg.norm(z, axis=-1, keepdims=True) + 1e-5
    zc = z * jnp.minimum(1.0, CLIP_R / zn)
    vn = jnp.linalg.norm(zc, axis=-1, keepdims=True)
    yh = jnp.tanh(vn) * zc / jnp.maximum(vn, 1e-15)
    yh = yh.astype(jnp.bfloat16).astype(jnp.float32)                  # bf16 MXU operand
    proto = prep["protoT"].astype(jnp.float32).T                      # (N_pad, E_pad)
    mp = -proto[None]                                                 # (1, Np, E)
    yv = yh[:, None, :]                                               # (B, 1, E)
    dp = jnp.sum(mp * yv, axis=-1)                                    # (B, Np)
    pp = jnp.sum(proto * proto, axis=-1)[None]                        # (1, Np)
    yy = jnp.sum(yh * yh, axis=-1)[:, None]                           # (B, 1)
    num = (1.0 + 2.0 * dp + yy)[..., None] * mp + (1.0 - pp)[..., None] * yv
    den = (1.0 + 2.0 * dp + pp * yy)[..., None]
    u = jnp.linalg.norm(num / den, axis=-1)
    u = jnp.clip(u, 0.0, 1.0 - 1e-7)
    return (-2.0 * jnp.arctanh(u) * TAU)[:, :N]


# ---------------------------------------------------------------------------
# Deterministic synthetic parameter init (no checkpoint / .npy load).
# ---------------------------------------------------------------------------
def init_raw_params(key, Cin, Cfeat, E, N):
    k1, k2, k3, k4, k5 = jax.random.split(key, 5)
    w_conv = jax.random.normal(k1, (Cin, Cfeat), jnp.float32) / np.sqrt(Cin)
    b_conv = jax.random.normal(k2, (1, Cfeat), jnp.float32) * 0.01
    w_fc = jax.random.normal(k3, (Cfeat, E), jnp.float32) / np.sqrt(Cfeat)
    b_fc = jax.random.normal(k4, (1, E), jnp.float32) * 0.01
    proto = jax.random.normal(k5, (N, E), jnp.float32)
    proto = proto / jnp.linalg.norm(proto, axis=1, keepdims=True)
    proto = proto * 0.85 / np.sqrt(CURVATURE)                         # load_prototypes scaling
    return dict(w_conv=w_conv, b_conv=b_conv, w_fc=w_fc, b_fc=b_fc, prototypes=proto)


if __name__ == "__main__":
    key = jax.random.PRNGKey(0)
    kx, kp = jax.random.split(key)
    B, Cin, H, W = 2, 4, 16, 16          # input: (B, Cin, H, W) NCHW
    Cfeat, E, N = 32, 16, 8              # backbone features, embed_dim, num_classes

    x = jax.random.normal(kx, (B, Cin, H, W), jnp.float32)
    raw = init_raw_params(kp, Cin, Cfeat, E, N)
    prep = prepare_params(raw)

    logits = retrieval_net_forward(x, prep)
    jax.block_until_ready(logits)

    ref = forward_ref(x, prep)
    assert logits.shape == (B, N)
    # bf16-operand pipeline: kernel and reference share the same quantization points,
    # residual differences are accumulation-order / transcendental-level.
    np.testing.assert_allclose(np.asarray(logits), np.asarray(ref), rtol=5e-3, atol=5e-3)
    print("KERNEL_OK")
</pallas_src>

<mosaic_0001>
module attributes {stable_mosaic.version = 11 : i64} {
  func.func @backbone_gap_kernel(%arg0: i32, %arg1: memref<1x4x256xf32, #tpu.memory_space<vmem>>, %arg2: memref<128x4xbf16, #tpu.memory_space<vmem>>, %arg3: memref<128x1xf32, #tpu.memory_space<vmem>>, %arg4: memref<1x1x128xbf16, #tpu.memory_space<vmem>>) attributes {dimension_semantics = [#tpu.dimension_semantics<parallel>], iteration_bounds = array<i64: 8>, scalar_prefetch = 0 : i64, scratch_operands = 0 : i64, tpu.core_type = #tpu.core_type<tc>, window_params = [{transform_indices = @transform_0, window_bounds = array<i64: 1, 4, 256>}, {pipeline_mode = #tpu.pipeline_mode<synchronous>, transform_indices = @transform_1, window_bounds = array<i64: 128, 4>}, {pipeline_mode = #tpu.pipeline_mode<synchronous>, transform_indices = @transform_2, window_bounds = array<i64: 128, 1>}, {transform_indices = @transform_3, window_bounds = array<i64: 1, 1, 128>}]} {
    %c0 = arith.constant 0 : index
    %c0_0 = arith.constant 0 : index
    %c0_1 = arith.constant 0 : index
    %0 = vector.load %arg1[%c0, %c0_0, %c0_1] : memref<1x4x256xf32, #tpu.memory_space<vmem>>, vector<1x4x256xf32>
    %1 = vector.shape_cast %0 : vector<1x4x256xf32> to vector<4x256xf32>
    %2 = arith.truncf %1 : vector<4x256xf32> to vector<4x256xbf16>
    %c0_2 = arith.constant 0 : index
    %c0_3 = arith.constant 0 : index
    %3 = vector.load %arg2[%c0_2, %c0_3] : memref<128x4xbf16, #tpu.memory_space<vmem>>, vector<128x4xbf16>
    %cst = arith.constant dense<0.000000e+00> : vector<128x256xf32>
    %4 = tpu.matmul %3, %2, %cst {dimension_numbers = #tpu.dot_dimension_numbers<[1], [0], [0], [1], [0, 0, 1, 1], [], []>} : vector<128x4xbf16>, vector<4x256xbf16>, vector<128x256xf32> -> vector<128x256xf32>
    %c0_4 = arith.constant 0 : index
    %c0_5 = arith.constant 0 : index
    %5 = vector.load %arg3[%c0_4, %c0_5] : memref<128x1xf32, #tpu.memory_space<vmem>>, vector<128x1xf32>
    %6 = vector.broadcast %5 : vector<128x1xf32> to vector<128x256xf32>
    %7 = arith.addf %4, %6 : vector<128x256xf32>
    %cst_6 = arith.constant 0.000000e+00 : f32
    %8 = vector.broadcast %cst_6 : f32 to vector<128x256xf32>
    %9 = arith.maximumf %7, %8 : vector<128x256xf32>
    %cst_7 = arith.constant 1.000000e+00 : f32
    %10 = vector.broadcast %cst_7 : f32 to vector<1x256xf32>
    "tpu.trace_start"() <{level = 10 : i32, message = "op,fp->of"}> : () -> ()
    %cst_8 = arith.constant dense<0.000000e+00> : vector<1x128xf32>
    %11 = tpu.matmul %10, %9, %cst_8 {dimension_numbers = #tpu.dot_dimension_numbers<[1], [1], [0], [0], [0, 0, 1, 0], [], []>} : vector<1x256xf32>, vector<128x256xf32>, vector<1x128xf32> -> vector<1x128xf32>
    "tpu.trace_stop"() : () -> ()
    %cst_9 = arith.constant 3.906250e-03 : f32
    %12 = vector.broadcast %cst_9 : f32 to vector<1x128xf32>
    %13 = arith.mulf %11, %12 : vector<1x128xf32>
    %14 = arith.truncf %13 : vector<1x128xf32> to vector<1x128xbf16>
    %c0_10 = arith.constant 0 : index
    %c0_11 = arith.constant 0 : index
    %c0_12 = arith.constant 0 : index
    %15 = vector.load %arg4[%c0_10, %c0_11, %c0_12] : memref<1x1x128xbf16, #tpu.memory_space<vmem>>, vector<1x1x128xbf16>
    %16 = vector.shape_cast %15 : vector<1x1x128xbf16> to vector<1x128xbf16>
    %17 = vector.shape_cast %14 : vector<1x128xbf16> to vector<1x1x128xbf16>
    tpu.vector_store %arg4[%c0_10, %c0_11, %c0_12], %17 {strides = array<i32>} : memref<1x1x128xbf16, #tpu.memory_space<vmem>>, vector<1x1x128xbf16>,
    return
  }
  func.func @transform_0(%arg0: i32) -> (i32, i32, i32) {
    %c0_i32 = arith.constant 0 : i32
    %c0_i32_0 = arith.constant 0 : i32
    %c0_i32_1 = arith.constant 0 : i32
    return %arg0, %c0_i32, %c0_i32_0 : i32, i32, i32
  }
  func.func @transform_1(%arg0: i32) -> (i32, i32) {
    %c0_i32 = arith.constant 0 : i32
    %c0_i32_0 = arith.constant 0 : i32
    %c0_i32_1 = arith.constant 0 : i32
    return %c0_i32, %c0_i32_0 : i32, i32
  }
  func.func @transform_2(%arg0: i32) -> (i32, i32) {
    %c0_i32 = arith.constant 0 : i32
    %c0_i32_0 = arith.constant 0 : i32
    %c0_i32_1 = arith.constant 0 : i32
    return %c0_i32, %c0_i32_0 : i32, i32
  }
  func.func @transform_3(%arg0: i32) -> (i32, i32, i32) {
    %c0_i32 = arith.constant 0 : i32
    %c0_i32_0 = arith.constant 0 : i32
    %c0_i32_1 = arith.constant 0 : i32
    return %arg0, %c0_i32, %c0_i32_0 : i32, i32, i32
  }
}

</mosaic_0001>

<bundles_post_ra>
// kernel: tpu_custom_call.1
= control target key start
LH: loop header
LB: loop body
LE: loop exit
PB: predicated region body
PF: predicated region fallthrough
CT: control target
= control target key end

     0   :  { %s738_s12 = smov 0   ;;  %s851_s0 = inlined_call_operand.vmem [shape: f32[8,4,256], index: 0, kind: input, shape index: {}]   ;;  %s852_s1 = inlined_call_operand.vmem [shape: bf16[128,4], index: 1, kind: input, shape index: {}]   ;;  %s853_s2 = inlined_call_operand.vmem [shape: f32[128,1], index: 2, kind: input, shape index: {}]   ;;  %s854_s3 = inlined_call_operand.vmem [shape: bf16[8,1,128], index: 3, kind: output, shape index: {}]  }
   0x1 LB: > { %s628_s13 = sadd.s32 4294967295, %s714_s12   ;;  %p632_p0 = scmp.ge.s32.totalorder %s714_s12, 1  ;;  %s714_s12 = sphi %s738_s12, %s13_s12  }
   0x2   : > { %p137_p1 = scmp.lt.s32.totalorder %s714_s12, 9 }
   0x4   : > { %p138_p2 = pnand %p632_p0, %p137_p1 }
   0x5   : > { %p159_p3 = scmp.lt.s32.totalorder (!%p138_p2), %s628_s13, 7  ;;  %v716_v0 = vmov (!%p138_p2), 0   ;;  %vm351_vm0 = vcmask (!%p138_p2), 1041408   ;;  %v190_v4 = vld [vmem:[%s853_s2] sm:$0xff] (!%p138_p2)  ;;  %v191_v7 = vld [vmem:[%s853_s2 + $0x8] sm:$0xff] (!%p138_p2)  ;;  %v192_v8 = vld [vmem:[%s853_s2 + $0x10] sm:$0xff] (!%p138_p2) }
   0x6   : > { %141 = sbr.rel (%p138_p2) target bundleno = 528 (0x210), region = 32  ;;  %390 = vmatprep.mubr.bf16.mxu0 (!%p138_p2), %v716_v0  ;;  %697 = vset.pattern.permute.xlu0 (!%p138_p2), %v716_v0  ;;  %v700_v9 = vld [vmem:[%s852_s1] sm:$0xff] (!%p138_p2)   ;;  %v193_v10 = vld [vmem:[%s853_s2 + $0x18] sm:$0xff] (!%p138_p2)  ;;  %vm326_vm1 = vcmask (!%p138_p2), 31744   ;;  %v195_v12 = vld [vmem:[%s853_s2 + $0x28] sm:$0xff] (!%p138_p2)  ;;  %v717_v30 = vmov (!%p138_p2), 1.0  }
   0x7   : > { %698 = vset.pattern.permute.xlu1 (!%p138_p2), %v716_v0  ;;  %208 = vperm.xlu0 (!%p138_p2), %697, %v190_v4   ;;  %v194_v11 = vld [vmem:[%s853_s2 + $0x20] sm:$0xff] (!%p138_p2)  ;;  %v196_v13 = vld [vmem:[%s853_s2 + $0x30] sm:$0xff] (!%p138_p2)  ;;  %v701_v14 = vld [vmem:[%s852_s1 + $0x8] sm:$0xff] (!%p138_p2)   ;;  %vm575_vm2 = vcmask (!%p138_p2), 1040384   ;;  %vm576_vm3 = vsmask.f32 (!%p138_p2), 256 }
   0x8   : > { %218 = vperm.xlu1 (!%p138_p2), %698, %v192_v8   ;;  %v197_v15 = vld [vmem:[%s853_s2 + $0x38] sm:$0xff] (!%p138_p2)  ;;  %v198_v16 = vld [vmem:[%s853_s2 + $0x40] sm:$0xff] (!%p138_p2)  ;;  %v199_v17 = vld [vmem:[%s853_s2 + $0x48] sm:$0xff] (!%p138_p2)  ;;  %567 = vmatprep.mubr.f32.mxu1 (!%p138_p2), %v717_v30 }
   0x9   : > { %v200_v18 = vld [vmem:[%s853_s2 + $0x50] sm:$0xff] (!%p138_p2)  ;;  %v201_v20 = vld [vmem:[%s853_s2 + $0x58] sm:$0xff] (!%p138_p2)  ;;  %v202_v21 = vld [vmem:[%s853_s2 + $0x60] sm:$0xff] (!%p138_p2) }
   0xa   : > { %v702_v19 = vld [vmem:[%s852_s1 + $0x10] sm:$0xff] (!%p138_p2)   ;;  %v203_v22 = vld [vmem:[%s853_s2 + $0x68] sm:$0xff] (!%p138_p2)  ;;  %v703_v24 = vld [vmem:[%s852_s1 + $0x18] sm:$0xff] (!%p138_p2)  }
   0xb   : > { %213 = vperm.xlu0 (!%p138_p2), %697, %v191_v7   ;;  %v204_v23 = vld [vmem:[%s853_s2 + $0x70] sm:$0xff] (!%p138_p2)  ;;  %v205_v25 = vld [vmem:[%s853_s2 + $0x78] sm:$0xff] (!%p138_p2)  ;;  %v704_v26 = vld [vmem:[%s852_s1 + $0x20] sm:$0xff] (!%p138_p2)  }
   0xc   : > { %223 = vperm.xlu1 (!%p138_p2), %698, %v193_v10   ;;  %v705_v27 = vld [vmem:[%s852_s1 + $0x28] sm:$0xff] (!%p138_p2)   ;;  %v706_v28 = vld [vmem:[%s852_s1 + $0x30] sm:$0xff] (!%p138_p2)   ;;  %v707_v29 = vld [vmem:[%s852_s1 + $0x38] sm:$0xff] (!%p138_p2)  }
   0xd   : > { %s856_s13 = smov (!%p159_p3, %s628_s13), 7  ;;  %vm577_vm4 = vmand %vm575_vm2, %vm576_vm3 }
   0xe   : > { %s654_s14 = sshll.u32 %s856_s13, 3  ;;  %s166_s18 = scalar_lea.vmem %s854_s3, %s856_s13 }
   0xf   : > { %s163_s17 = scalar_lea.vmem %s851_s0, %s654_s14  ;;  %228 = vperm.xlu0 %697, %v194_v11  }
  0x10   : > { %v168_v1 = vld [vmem:[%s163_s17] sm:$0xff]  ;;  %233 = vperm.xlu1 %698, %v195_v12  }
  0x11   : > { %v170_v2 = vcombine.high %v168_v1, %v168_v1  ;;  %v172_v3 = vpack.c.bf16 %v168_v1, %v168_v1 }
  0x13   : > { %v173_v5 = vpack.c.bf16 %v170_v2, %v170_v2  ;;  %v353_v6 = vsel %vm351_vm0, %v172_v3, 0  ;;  %238 = vperm.xlu0 %697, %v196_v13  }
  0x14   : > { %243 = vperm.xlu1 %698, %v197_v15  }
  0x15   : > { %643 = vmatprep.subr.msk.bf16.mxu0 %vm351_vm0, %v173_v5 }
  0x16   : > { %359 = vmatpush1.bf16.msra.mxu0 %v353_v6 }
  0x17   : > { %248 = vperm.xlu0 %697, %v198_v16  }
  0x18   : > { %253 = vperm.xlu1 %698, %v199_v17  }
  0x19   : > { %644 = vmatmul.mubr.msk.bf16.vlgmr.msra.gmra.mrb[0].mxu0 %vm326_vm1, %v700_v9 }
  0x1a   : > { %400 = vmatprep.mubr.bf16.mxu0 %v716_v0 }
  0x1b   : > { %258 = vperm.xlu0 %697, %v200_v18  }
  0x1c   : > { %263 = vperm.xlu1 %698, %v201_v20  }
  0x1f   : > { %268 = vperm.xlu0 %697, %v202_v21  }
  0x20   : > { %273 = vperm.xlu1 %698, %v203_v22  }
  0x21   : > { %645 = vmatmul.mubr.msk.bf16.gmra.mrb[4].mxu0 %vm326_vm1, %v701_v14 }
  0x22   : > { %410 = vmatprep.mubr.bf16.mxu0 %v716_v0 }
  0x23   : > { %278 = vperm.xlu0 %697, %v204_v23  }
  0x24   : > { %283 = vperm.xlu1 %698, %v205_v25  }
  0x29   : > { %646 = vmatmul.mubr.msk.bf16.gmra.mrb[8].mxu0 %vm326_vm1, %v702_v19 }
  0x2a   : > { %420 = vmatprep.mubr.bf16.mxu0 %v716_v0 }
  0x31   : > { %647 = vmatmul.mubr.msk.bf16.gmra.mrb[12].mxu0 %vm326_vm1, %v703_v24 }
  0x32   : > { %430 = vmatprep.mubr.bf16.mxu0 %v716_v0 }
  0x39   : > { %648 = vmatmul.mubr.msk.bf16.gmra.mrb[16].mxu0 %vm326_vm1, %v704_v26 }
  0x3a   : > { %440 = vmatprep.mubr.bf16.mxu0 %v716_v0 }
  0x41   : > { %649 = vmatmul.mubr.msk.bf16.gmra.mrb[20].mxu0 %vm326_vm1, %v705_v27 }
  0x42   : > { %450 = vmatprep.mubr.bf16.mxu0 %v716_v0 }
  0x49   : > { %650 = vmatmul.mubr.msk.bf16.gmra.mrb[24].mxu0 %vm326_vm1, %v706_v28 }
  0x4a   : > { %460 = vmatprep.mubr.bf16.mxu0 %v716_v0 }
  0x51   : > { %651 = vmatmul.mubr.msk.bf16.gmra.mrb[28].mxu0 %vm326_vm1, %v707_v29 }
  0x86   : > { %v209_v31 = vpop.permute.xlu0 %208 }
  0x87   : > { %v219_v40 = vpop.permute.xlu1 %218 }
  0x8a   : > { %v214_v35 = vpop.permute.xlu0 %213 }
  0x8b   : > { %v224_v51 = vpop.permute.xlu1 %223 }
  0x8e   : > { %v229_v62 = vpop.permute.xlu0 %228 }
  0x8f   : > { %v234_v3 = vpop.permute.xlu1 %233 }
  0x92   : > { %v239_v14 = vpop.permute.xlu0 %238 }
  0x93   : > { %v244_v19 = vpop.permute.xlu1 %243 }
  0xec   : > { %v392_v32 = vpop.f32.mrb[0].mxu0 }
  0xed   : > { %v393_v33 = vadd.f32 %v392_v32, %v209_v31  ;;  %v394_v34 = vpop.f32.mrb[1].mxu0 }
  0xee   : > { %v395_v36 = vadd.f32 %v394_v34, %v209_v31  ;;  %v396_v37 = vpop.f32.mrb[2].mxu0  ;;  %v249_v31 = vpop.permute.xlu0 %248 }
  0xef   : > { %v397_v38 = vadd.f32 %v396_v37, %v214_v35  ;;  %v398_v39 = vpop.f32.mrb[3].mxu0  ;;  %v471_v42 = vmax.f32 %v393_v33, 0.0 }
  0xf0   : > { %v399_v41 = vadd.f32 %v398_v39, %v214_v35  ;;  %v472_v44 = vmax.f32 %v395_v36, 0.0  ;;  %v254_v36 = vpop.permute.xlu1 %253 }
  0xf1   : > { %v473_v43 = vmax.f32 %v397_v38, 0.0 }
  0xf2   : > { %v474_v45 = vmax.f32 %v399_v41, 0.0 }
  0xf3   : > { %v657_v46 = vpack.c.bf16 %v473_v43, %v471_v42 }
  0xf4   : > { %v402_v47 = vpop.f32.mrb[4].mxu0  ;;  %v655_v48 = vpack.c.bf16 %v474_v45, %v472_v44 }
  0xf5   : > { %v403_v49 = vadd.f32 %v402_v47, %v219_v40  ;;  %v404_v50 = vpop.f32.mrb[5].mxu0  ;;  %v259_v47 = vpop.permute.xlu0 %258 }
  0xf6   : > { %v405_v52 = vadd.f32 %v404_v50, %v219_v40  ;;  %v406_v53 = vpop.f32.mrb[6].mxu0  ;;  %656 = vmatprep.subr.bf16.mxu1 %v655_v48 }
  0xf7   : > { %v407_v54 = vadd.f32 %v406_v53, %v224_v51  ;;  %v408_v55 = vpop.f32.mrb[7].mxu0  ;;  %658 = vmatpush1.bf16.xpose.msra.mxu1 %v657_v46  ;;  %v475_v57 = vmax.f32 %v403_v49, 0.0 }
  0xf8   : > { %v409_v56 = vadd.f32 %v408_v55, %v224_v51  ;;  %v476_v59 = vmax.f32 %v405_v52, 0.0  ;;  %v264_v52 = vpop.permute.xlu1 %263 }
  0xf9   : > { %v477_v58 = vmax.f32 %v407_v54, 0.0 }
  0xfa   : > { %v478_v60 = vmax.f32 %v409_v56, 0.0 }
  0xfb   : > { %v661_v61 = vpack.c.bf16 %v477_v58, %v475_v57 }
  0xfc   : > { %v659_v63 = vpack.c.bf16 %v478_v60, %v476_v59  ;;  %v412_v0 = vpop.f32.mrb[8].mxu0 }
  0xfd   : > { %v413_v1 = vadd.f32 %v412_v0, %v229_v62  ;;  %v414_v2 = vpop.f32.mrb[9].mxu0 }
  0xfe   : > { %v415_v4 = vadd.f32 %v414_v2, %v229_v62  ;;  %v416_v5 = vpop.f32.mrb[10].mxu0  ;;  %660 = vmatprep.subr.bf16.mxu1 %v659_v63  ;;  %v269_v63 = vpop.permute.xlu0 %268 }
  0xff   : > { %v417_v6 = vadd.f32 %v416_v5, %v234_v3  ;;  %v418_v7 = vpop.f32.mrb[11].mxu0  ;;  %662 = vmatpush1.bf16.xpose.msra.mxu1 %v661_v61  ;;  %v479_v9 = vmax.f32 %v413_v1, 0.0 }
 0x100   : > { %v419_v8 = vadd.f32 %v418_v7, %v234_v3  ;;  %v480_v11 = vmax.f32 %v415_v4, 0.0  ;;  %v274_v4 = vpop.permute.xlu1 %273 }
 0x101   : > { %v481_v10 = vmax.f32 %v417_v6, 0.0 }
 0x102   : > { %v482_v12 = vmax.f32 %v419_v8, 0.0 }
 0x103   : > { %v665_v13 = vpack.c.bf16 %v481_v10, %v479_v9 }
 0x104   : > { %v663_v15 = vpack.c.bf16 %v482_v12, %v480_v11  ;;  %v422_v16 = vpop.f32.mrb[12].mxu0 }
 0x105   : > { %v423_v17 = vadd.f32 %v422_v16, %v239_v14  ;;  %v424_v18 = vpop.f32.mrb[13].mxu0 }
 0x106   : > { %v425_v20 = vadd.f32 %v424_v18, %v239_v14  ;;  %v426_v21 = vpop.f32.mrb[14].mxu0  ;;  %664 = vmatprep.subr.bf16.mxu1 %v663_v15  ;;  %v279_v15 = vpop.permute.xlu0 %278 }
 0x107   : > { %v427_v22 = vadd.f32 %v426_v21, %v244_v19  ;;  %v428_v23 = vpop.f32.mrb[15].mxu0  ;;  %666 = vmatpush1.bf16.xpose.msra.mxu1 %v665_v13  ;;  %v483_v25 = vmax.f32 %v423_v17, 0.0 }
 0x108   : > { %v429_v24 = vadd.f32 %v428_v23, %v244_v19  ;;  %v484_v27 = vmax.f32 %v425_v20, 0.0  ;;  %v284_v20 = vpop.permute.xlu1 %283 }
 0x109   : > { %v485_v26 = vmax.f32 %v427_v22, 0.0 }
 0x10a   : > { %v486_v28 = vmax.f32 %v429_v24, 0.0 }
 0x10b   : > { %v669_v29 = vpack.c.bf16 %v485_v26, %v483_v25 }
 0x10c   : > { %v667_v32 = vpack.c.bf16 %v486_v28, %v484_v27  ;;  %v432_v33 = vpop.f32.mrb[16].mxu0 }
 0x10d   : > { %v433_v34 = vadd.f32 %v432_v33, %v249_v31  ;;  %v434_v35 = vpop.f32.mrb[17].mxu0 }
 0x10e   : > { %v435_v37 = vadd.f32 %v434_v35, %v249_v31  ;;  %v436_v38 = vpop.f32.mrb[18].mxu0  ;;  %668 = vmatprep.subr.bf16.mxu1 %v667_v32 }
 0x10f   : > { %v437_v39 = vadd.f32 %v436_v38, %v254_v36  ;;  %v438_v40 = vpop.f32.mrb[19].mxu0  ;;  %670 = vmatpush1.bf16.xpose.msra.mxu1 %v669_v29  ;;  %v487_v42 = vmax.f32 %v433_v34, 0.0 }
 0x110   : > { %v439_v41 = vadd.f32 %v438_v40, %v254_v36  ;;  %v488_v44 = vmax.f32 %v435_v37, 0.0  ;;  %v578_v36 = vld [vmem:[%s166_s18] sm:$0x1] }
 0x111   : > { %v489_v43 = vmax.f32 %v437_v39, 0.0 }
 0x112   : > { %v490_v45 = vmax.f32 %v439_v41, 0.0 }
 0x113   : > { %v673_v46 = vpack.c.bf16 %v489_v43, %v487_v42 }
 0x114   : > { %v671_v48 = vpack.c.bf16 %v490_v45, %v488_v44  ;;  %v442_v49 = vpop.f32.mrb[20].mxu0 }
 0x115   : > { %v443_v50 = vadd.f32 %v442_v49, %v259_v47  ;;  %v444_v51 = vpop.f32.mrb[21].mxu0 }
 0x116   : > { %v445_v53 = vadd.f32 %v444_v51, %v259_v47  ;;  %v446_v54 = vpop.f32.mrb[22].mxu0  ;;  %672 = vmatprep.subr.bf16.mxu1 %v671_v48 }
 0x117   : > { %v447_v55 = vadd.f32 %v446_v54, %v264_v52  ;;  %v448_v56 = vpop.f32.mrb[23].mxu0  ;;  %674 = vmatpush1.bf16.xpose.msra.mxu1 %v673_v46  ;;  %v491_v58 = vmax.f32 %v443_v50, 0.0 }
 0x118   : > { %v449_v57 = vadd.f32 %v448_v56, %v264_v52  ;;  %v492_v60 = vmax.f32 %v445_v53, 0.0 }
 0x119   : > { %v493_v59 = vmax.f32 %v447_v55, 0.0 }
 0x11a   : > { %v494_v61 = vmax.f32 %v449_v57, 0.0 }
 0x11b   : > { %v677_v62 = vpack.c.bf16 %v493_v59, %v491_v58 }
 0x11c   : > { %v675_v0 = vpack.c.bf16 %v494_v61, %v492_v60  ;;  %v452_v1 = vpop.f32.mrb[24].mxu0 }
 0x11d   : > { %v453_v2 = vadd.f32 %v452_v1, %v269_v63  ;;  %v454_v3 = vpop.f32.mrb[25].mxu0 }
 0x11e   : > { %v455_v5 = vadd.f32 %v454_v3, %v269_v63  ;;  %v456_v6 = vpop.f32.mrb[26].mxu0  ;;  %676 = vmatprep.subr.bf16.mxu1 %v675_v0 }
 0x11f   : > { %v457_v7 = vadd.f32 %v456_v6, %v274_v4  ;;  %v458_v8 = vpop.f32.mrb[27].mxu0  ;;  %678 = vmatpush1.bf16.xpose.msra.mxu1 %v677_v62  ;;  %v495_v10 = vmax.f32 %v453_v2, 0.0 }
 0x120   : > { %v459_v9 = vadd.f32 %v458_v8, %v274_v4  ;;  %v496_v12 = vmax.f32 %v455_v5, 0.0 }
 0x121   : > { %v497_v11 = vmax.f32 %v457_v7, 0.0 }
 0x122   : > { %v498_v13 = vmax.f32 %v459_v9, 0.0 }
 0x123   : > { %v681_v14 = vpack.c.bf16 %v497_v11, %v495_v10 }
 0x124   : > { %v679_v16 = vpack.c.bf16 %v498_v13, %v496_v12  ;;  %v462_v17 = vpop.f32.mrb[28].mxu0 }
 0x125   : > { %v463_v18 = vadd.f32 %v462_v17, %v279_v15  ;;  %v464_v19 = vpop.f32.mrb[29].mxu0 }
 0x126   : > { %v465_v21 = vadd.f32 %v464_v19, %v279_v15  ;;  %v466_v22 = vpop.f32.mrb[30].mxu0  ;;  %680 = vmatprep.subr.bf16.mxu1 %v679_v16 }
 0x127   : > { %v467_v23 = vadd.f32 %v466_v22, %v284_v20  ;;  %v468_v24 = vpop.f32.mrb[31].mxu0  ;;  %682 = vmatpush1.bf16.xpose.msra.mxu1 %v681_v14  ;;  %v499_v26 = vmax.f32 %v463_v18, 0.0 }
 0x128   : > { %v469_v25 = vadd.f32 %v468_v24, %v284_v20  ;;  %v500_v28 = vmax.f32 %v465_v21, 0.0 }
 0x129   : > { %v501_v27 = vmax.f32 %v467_v23, 0.0 }
 0x12a   : > { %v502_v29 = vmax.f32 %v469_v25, 0.0 }
 0x12b   : > { %v685_v31 = vpack.c.bf16 %v501_v27, %v499_v26 }
 0x12c   : > { %v683_v32 = vpack.c.bf16 %v502_v29, %v500_v28 }
 0x12e   : > { %684 = vmatprep.subr.bf16.mxu1 %v683_v32 }
 0x12f   : > { %686 = vmatpush1.bf16.xpose.msra.mxu1 %v685_v31 }
 0x136   : > { %568 = vmatmul.mubr.f32.vlgmr.msra.gmra.mrb[0].mxu1 %v717_v30 }
 0x209   : > { %v569_v33 = vpop.f32.mrb[0].mxu1 }
 0x20a   : > { %v573_v34 = vmul.f32 0.00390625, %v569_v33  ;;  %v571_v35 = vpop.f32.mrb[1].mxu1 }
 0x20c   : > { %v574_v37 = vpack.c.bf16 %v573_v34, %v573_v34 }
 0x20e   : > { %v579_v38 = vsel %vm577_vm4, %v574_v37, %v578_v36 }
 0x20f   : > { %580 = vst [vmem:[%s166_s18] sm:$0x1] %v579_v38 }
 0x210 PF: > { %s13_s12 = sadd.s32 1, %s714_s12  }
 0x211   : > { %p10_p4 = scmp.ge.s32.totalorder %s13_s12, 10  }
 0x213   :  { %12 = sbr.rel (!%p10_p4) target bundleno = 1 (0x1), region = 62 }

</bundles_post_ra>
